<compile_context>
chip_gen: v6e
topology: v6e:2x2x1
jax: 0.10.0
libtpu: 0.0.40
codegen_flags: <defaults>
</compile_context>

<pallas_src>
import functools

import jax
import jax.numpy as jnp
from jax.experimental import pallas as pl
from jax.experimental.pallas import tpu as pltpu


def _round_up(x, m):
    return (x + m - 1) // m * m


def _sublane_multiple(dtype):
    # Native sublane packing: 8 rows for 4-byte, 16 for 2-byte, 32 for 1-byte.
    return max(8, 32 // jnp.dtype(dtype).itemsize)


# ---------------------------------------------------------------------------
# Kernels
# ---------------------------------------------------------------------------
def _linear_kernel_single_k(x_ref, w_ref, b_ref, o_ref, *, compute_dtype=None):
    """K fits in one tile: o = (x @ w + b). No scratch accumulator needed."""
    x = x_ref[...]
    w = w_ref[...]
    if compute_dtype is not None:
        x = x.astype(compute_dtype)
        w = w.astype(compute_dtype)
    acc = jnp.dot(x, w, preferred_element_type=jnp.float32)
    o_ref[...] = (acc + b_ref[...].astype(jnp.float32)).astype(o_ref.dtype)


def _linear_kernel_acc(x_ref, w_ref, b_ref, o_ref, acc_ref, *, compute_dtype=None):
    """One (tm, tn) output tile, accumulated over the K grid axis."""
    k = pl.program_id(2)

    @pl.when(k == 0)
    def _init():
        # Fold the bias into the accumulator init (added exactly once).
        acc_ref[...] = jnp.broadcast_to(
            b_ref[...].astype(jnp.float32), acc_ref.shape)

    x = x_ref[...]
    w = w_ref[...]
    if compute_dtype is not None:
        x = x.astype(compute_dtype)
        w = w.astype(compute_dtype)
    # MXU matmul, f32 accumulation. Weight is already (K, N): no in-kernel transpose.
    acc_ref[...] += jnp.dot(x, w, preferred_element_type=jnp.float32)

    @pl.when(k == pl.num_programs(2) - 1)
    def _store():
        o_ref[...] = acc_ref[...].astype(o_ref.dtype)


def _weight_block_spec(block_shape, index_map, buffers):
    """Weight-stream BlockSpec; request deeper pipelining when asked & supported."""
    if buffers is not None and buffers > 2:
        try:
            return pl.BlockSpec(block_shape, index_map,
                                pipeline_mode=pl.Buffered(buffers))
        except (TypeError, AttributeError):
            pass  # fall back to default double-buffering on older/newer APIs
    return pl.BlockSpec(block_shape, index_map)


# ---------------------------------------------------------------------------
# Parameter preparation (hoisted, one-time layout fix)
# ---------------------------------------------------------------------------
def prepare_fclayer_params(weight, bias, *, tn=512, tk=1024, param_dtype=None):
    """Transpose/pad nn.Linear params ONCE so the forward never re-streams them.

    weight: (Out, In)  -- PyTorch nn.Linear layout
    bias:   (Out,)
    Returns (w_t, b2): weight as (In_p, Out_p), bias as (1, Out_p), zero-padded
    to tile multiples. Optionally cast the weight to `param_dtype`
    (e.g. jnp.bfloat16) to halve the dominant HBM stream.
    """
    out_f, in_f = weight.shape
    tk = min(tk, _round_up(in_f, 128))
    tn = min(tn, _round_up(out_f, 128))
    kp = _round_up(in_f, tk)
    np_ = _round_up(out_f, tn)

    w_t = weight.T
    if param_dtype is not None:
        w_t = w_t.astype(param_dtype)
    if (kp, np_) != (in_f, out_f):
        w_t = jnp.pad(w_t, ((0, kp - in_f), (0, np_ - out_f)))

    b2 = bias.reshape(1, out_f)
    if np_ != out_f:
        b2 = jnp.pad(b2, ((0, 0), (0, np_ - out_f)))
    return w_t, b2


# ---------------------------------------------------------------------------
# Forward
# ---------------------------------------------------------------------------
@functools.partial(
    jax.jit,
    static_argnames=("out_features", "tm", "tn", "tk", "weight_buffers",
                     "compute_dtype"),
)
def fclayer_forward(x, w_t, b2, *, out_features=None, tm=512, tn=512, tk=1024,
                    weight_buffers=3, compute_dtype=None):
    """y = x @ W^T + b with a tiled, software-pipelined Pallas matmul.

    x:   (B, In)
    w_t: (Kp, Np)  pre-transposed/padded weight from prepare_fclayer_params
    b2:  (1, Np)   pre-reshaped/padded bias
    """
    bsz, in_f = x.shape
    kp, np_ = w_t.shape
    assert in_f <= kp, (in_f, kp)
    assert b2.shape == (1, np_), (b2.shape, np_)

    # Tile selection: 256-aligned defaults for the v6e/v7x MXU, clamped to the
    # (padded) problem; batch tile rounded to the dtype's native sublane count.
    tm = min(tm, _round_up(bsz, _sublane_multiple(x.dtype)))
    tk = min(tk, kp)
    tn = min(tn, np_)
    assert kp % tk == 0 and np_ % tn == 0, (
        "weights must be prepared with tile-compatible padding "
        "(use prepare_fclayer_params with matching tn/tk)")

    mp = _round_up(bsz, tm)

    # v7x megacore: with a single M block, make sure the parallel N axis has at
    # least 2 blocks so both TensorCores get work (no effect on v5e/v6e).
    while ((mp // tm) * (np_ // tn) < 2 and tn % 256 == 0
           and np_ % (tn // 2) == 0):
        tn //= 2

    if (mp, kp) != (bsz, in_f):
        # Zero K-padding contributes nothing; M padding is sliced off below.
        x = jnp.pad(x, ((0, mp - bsz), (0, kp - in_f)))

    n_k = kp // tk
    x_bytes = jnp.dtype(x.dtype).itemsize
    w_bytes = jnp.dtype(w_t.dtype).itemsize
    o_bytes = x_bytes

    w_bufs = weight_buffers if (n_k > 1 and weight_buffers) else 2
    vmem_need = (2 * tm * tk * x_bytes            # x tiles (double-buffered)
                 + w_bufs * tk * tn * w_bytes     # weight tiles
                 + 2 * tm * tn * o_bytes          # output tiles
                 + (tm * tn * 4 if n_k > 1 else 0)  # f32 accumulator
                 + 2 * tn * jnp.dtype(b2.dtype).itemsize)
    # +50% headroom; >= 32 MiB, capped at 64 MiB so it is legal on v7x too.
    vmem_limit = int(min(max(vmem_need * 3 // 2, 32 * 1024 * 1024),
                         64 * 1024 * 1024))

    cost = pl.CostEstimate(
        flops=2 * mp * np_ * kp,
        transcendentals=0,
        bytes_accessed=int(mp * kp * x_bytes * (np_ // tn)
                           + kp * np_ * w_bytes * (mp // tm)
                           + mp * np_ * o_bytes
                           + np_ * jnp.dtype(b2.dtype).itemsize),
    )

    if n_k == 1:
        # Single-K fast path: no accumulator scratch, no pl.when branches.
        grid = (mp // tm, np_ // tn)
        kernel = functools.partial(_linear_kernel_single_k,
                                   compute_dtype=compute_dtype)
        out = pl.pallas_call(
            kernel,
            out_shape=jax.ShapeDtypeStruct((mp, np_), x.dtype),
            grid_spec=pltpu.PrefetchScalarGridSpec(
                num_scalar_prefetch=0,
                grid=grid,
                in_specs=[
                    pl.BlockSpec((tm, tk), lambda i, j: (i, 0)),   # x tile
                    pl.BlockSpec((tk, tn), lambda i, j: (0, j)),   # w^T tile
                    pl.BlockSpec((1, tn), lambda i, j: (0, j)),    # bias tile
                ],
                out_specs=pl.BlockSpec((tm, tn), lambda i, j: (i, j)),
            ),
            compiler_params=pltpu.CompilerParams(
                dimension_semantics=("parallel", "parallel"),
                vmem_limit_bytes=vmem_limit,
            ),
            cost_estimate=cost,
        )(x, w_t, b2)
    else:
        grid = (mp // tm, np_ // tn, n_k)
        kernel = functools.partial(_linear_kernel_acc,
                                   compute_dtype=compute_dtype)
        out = pl.pallas_call(
            kernel,
            out_shape=jax.ShapeDtypeStruct((mp, np_), x.dtype),
            grid_spec=pltpu.PrefetchScalarGridSpec(
                num_scalar_prefetch=0,
                grid=grid,
                in_specs=[
                    pl.BlockSpec((tm, tk), lambda i, j, k: (i, k)),          # x
                    _weight_block_spec((tk, tn), lambda i, j, k: (k, j),
                                       w_bufs),                              # w^T
                    pl.BlockSpec((1, tn), lambda i, j, k: (0, j)),           # bias
                ],
                out_specs=pl.BlockSpec((tm, tn), lambda i, j, k: (i, j)),
                scratch_shapes=[pltpu.VMEM((tm, tn), jnp.float32)],
            ),
            compiler_params=pltpu.CompilerParams(
                dimension_semantics=("parallel", "parallel", "arbitrary"),
                vmem_limit_bytes=vmem_limit,
            ),
            cost_estimate=cost,
        )(x, w_t, b2)

    if out_features is None:
        out_features = np_
    if (mp, np_) != (bsz, out_features):
        out = out[:bsz, :out_features]
    return out


def init_fclayer_params(key, input_size, output_size, dtype=jnp.float32):
    # Deterministic init mirroring nn.Linear's uniform(-1/sqrt(in), 1/sqrt(in)).
    kw, kb = jax.random.split(key)
    bound = 1.0 / jnp.sqrt(jnp.asarray(input_size, dtype))
    weight = jax.random.uniform(kw, (output_size, input_size), dtype,
                                minval=-bound, maxval=bound)
    bias = jax.random.uniform(kb, (output_size,), dtype,
                              minval=-bound, maxval=bound)
    return weight, bias


if __name__ == "__main__":
    key = jax.random.PRNGKey(0)
    k_x, k_p = jax.random.split(key)

    # Small but MXU-relevant shapes for the FC layer (nn.Linear forward).
    batch, input_size, output_size = 16, 512, 256
    x = jax.random.normal(k_x, (batch, input_size), jnp.float32)
    weight, bias = init_fclayer_params(k_p, input_size, output_size)

    # One-time layout fix (hoisted out of the per-call path).
    w_t, b2 = prepare_fclayer_params(weight, bias)

    # Reference with full-precision matmul. The kernel runs at the MXU's default
    # f32 precision (bf16 passes), so the tolerance is set accordingly.
    y_ref = jnp.dot(x, weight.T, precision=jax.lax.Precision.HIGHEST) + bias

    # 1) Single-K fast path (K fits in one tile); grid parallel over (M, N).
    y = fclayer_forward(x, w_t, b2, out_features=output_size)
    jax.block_until_ready(y)
    assert y.shape == (batch, output_size), y.shape
    assert jnp.allclose(y, y_ref, atol=1e-2, rtol=1e-2), float(
        jnp.max(jnp.abs(y - y_ref)))

    # 2) Multi-K accumulator path (tk forced below K): bias folded at k == 0,
    #    f32 VMEM accumulator, reduction axis last ("arbitrary").
    y2 = fclayer_forward(x, w_t, b2, out_features=output_size, tk=256,
                         weight_buffers=2)
    jax.block_until_ready(y2)
    assert jnp.allclose(y2, y_ref, atol=1e-2, rtol=1e-2), float(
        jnp.max(jnp.abs(y2 - y_ref)))

    print("KERNEL_OK")
</pallas_src>

<mosaic_0001>
module attributes {stable_mosaic.version = 11 : i64} {
  func.func @_linear_kernel_single_k(%arg0: i32, %arg1: i32, %arg2: memref<16x512xf32, #tpu.memory_space<vmem>>, %arg3: memref<512x128xf32, #tpu.memory_space<vmem>>, %arg4: memref<1x128xf32, #tpu.memory_space<vmem>>, %arg5: memref<16x128xf32, #tpu.memory_space<vmem>>) attributes {dimension_semantics = [#tpu.dimension_semantics<parallel>, #tpu.dimension_semantics<parallel>], iteration_bounds = array<i64: 1, 2>, scalar_prefetch = 0 : i64, scratch_operands = 0 : i64, tpu.core_type = #tpu.core_type<tc>, window_params = [{transform_indices = @transform_0, window_bounds = array<i64: 16, 512>}, {transform_indices = @transform_1, window_bounds = array<i64: 512, 128>}, {transform_indices = @transform_2, window_bounds = array<i64: 1, 128>}, {transform_indices = @transform_3, window_bounds = array<i64: 16, 128>}]} {
    %c0 = arith.constant 0 : index
    %c0_0 = arith.constant 0 : index
    %0 = vector.load %arg2[%c0, %c0_0] : memref<16x512xf32, #tpu.memory_space<vmem>>, vector<16x512xf32>
    %c0_1 = arith.constant 0 : index
    %c0_2 = arith.constant 0 : index
    %1 = vector.load %arg3[%c0_1, %c0_2] : memref<512x128xf32, #tpu.memory_space<vmem>>, vector<512x128xf32>
    %cst = arith.constant dense<0.000000e+00> : vector<16x128xf32>
    %2 = tpu.matmul %0, %1, %cst {dimension_numbers = #tpu.dot_dimension_numbers<[1], [0], [0], [1], [0, 0, 1, 1], [], []>} : vector<16x512xf32>, vector<512x128xf32>, vector<16x128xf32> -> vector<16x128xf32>
    %c0_3 = arith.constant 0 : index
    %c0_4 = arith.constant 0 : index
    %3 = vector.load %arg4[%c0_3, %c0_4] : memref<1x128xf32, #tpu.memory_space<vmem>>, vector<1x128xf32>
    %4 = vector.broadcast %3 : vector<1x128xf32> to vector<16x128xf32>
    %5 = arith.addf %2, %4 : vector<16x128xf32>
    %c0_5 = arith.constant 0 : index
    %c0_6 = arith.constant 0 : index
    %6 = vector.load %arg5[%c0_5, %c0_6] : memref<16x128xf32, #tpu.memory_space<vmem>>, vector<16x128xf32>
    tpu.vector_store %arg5[%c0_5, %c0_6], %5 {strides = array<i32>} : memref<16x128xf32, #tpu.memory_space<vmem>>, vector<16x128xf32>,
    return
  }
  func.func @transform_0(%arg0: i32, %arg1: i32) -> (i32, i32) {
    %c0_i32 = arith.constant 0 : i32
    %c0_i32_0 = arith.constant 0 : i32
    return %arg0, %c0_i32 : i32, i32
  }
  func.func @transform_1(%arg0: i32, %arg1: i32) -> (i32, i32) {
    %c0_i32 = arith.constant 0 : i32
    %c0_i32_0 = arith.constant 0 : i32
    return %c0_i32, %arg1 : i32, i32
  }
  func.func @transform_2(%arg0: i32, %arg1: i32) -> (i32, i32) {
    %c0_i32 = arith.constant 0 : i32
    %c0_i32_0 = arith.constant 0 : i32
    return %c0_i32, %arg1 : i32, i32
  }
  func.func @transform_3(%arg0: i32, %arg1: i32) -> (i32, i32) {
    %c0_i32 = arith.constant 0 : i32
    return %arg0, %arg1 : i32, i32
  }
}

</mosaic_0001>

<bundles_post_ra>
// kernel: fclayer_forward.1
= control target key start
LH: loop header
LB: loop body
LE: loop exit
PB: predicated region body
PF: predicated region fallthrough
CT: control target
= control target key end

     0   :  { %8 = vsyncpa [#allocation3], 0  ;;  %s1186_s0 = inlined_call_operand.hbm [shape: f32[16,512], index: 0, kind: input, shape index: {}]   ;;  %s1187_s1 = inlined_call_operand.hbm [shape: f32[512,256], index: 1, kind: input, shape index: {}]   ;;  %s1188_s2 = inlined_call_operand.vmem [shape: f32[1,256], index: 2, kind: input, shape index: {}]   ;;  %s1189_s3 = inlined_call_operand.hbm [shape: f32[16,256], index: 3, kind: output, shape index: {}]  }
   0x1   :  { %9 = vsyncpa [#allocation6], 0 }
   0x2   :  { %11 = vsyncpa [#allocation6 + $0x1], 0 }
   0x3   :  { %12 = vsyncpa [#allocation4], 0 }
   0x4   :  { %14 = vsyncpa [#allocation4 + $0x1], 0  ;;  %s939_s12 = smov 0   ;;  %s941_s13 = smov 0  }
   0x5   :  { %s943_s14 = smov 0   ;;  %s945_s15 = smov 0  }
   0x6   :  { %s947_s16 = smov 0   ;;  %s949_s17 = smov 0  }
   0x7 LB: > { %1195 = sst [smem:[#allocation11_spill]] %s906_s17  ;;  %s595_s18 = sadd.s32 4294967295, %s906_s17   ;;  %s906_s17 = sphi %s949_s17, %s20_s17   ;;  %s902_s16 = sphi %s947_s16, %s1215_s16   ;;  %s898_s15 = sphi %s945_s15, %s1214_s15   ;;  %s894_s14 = sphi %s943_s14, %s1213_s14   ;;  %s890_s13 = sphi %s941_s13, %s1212_s13   ;;  %s886_s12 = sphi %s939_s12, %s1211_s12  }
   0x8   : > { %s596_s19 = sadd.s32 4294967294, %s906_s17   ;;  %p72_p0 = scmp.ne.s32.totalorder %s894_s14, %s890_s13 }
   0x9   : > { %p73_p1 = scmp.eq.s32.totalorder %s906_s17, 0  ;;  %p78_p2 = scmp.ne.s32.totalorder %s890_s13, %s886_s12 }
   0xa   : > { %p976_p3 = scmp.eq.s32.totalorder %s595_s18, 0  ;;  %p130_p5 = scmp.eq.s32.totalorder %s595_s18, 1 }
   0xb   : > { %p980_p4 = por %p73_p1, %p72_p0  ;;  %p136_p7 = scmp.eq.s32.totalorder %s596_s19, 1 }
   0xc   : > { %p986_p6 = por %p976_p3, %p78_p2  ;;  %p990_p8 = por %p130_p5, %p72_p0 }
   0xd   : > { %p597_p9 = scmp.ge.s32.totalorder %s906_s17, 1  ;;  %p995_p10 = por %p136_p7, %p78_p2 }
   0xe   : > { %s1198_s22 = scalar_select %p986_p6, 1, 0 }
   0xf   : > { %s1199_s23 = scalar_select %p990_p8, 1, 0 }
  0x10   : > { %s1200_s24 = scalar_select %p995_p10, 1, 0 }
  0x11   : > { %p143_p11 = scmp.lt.s32.totalorder %s906_s17, 3  ;;  %s908_s26 = smov [#allocation2]  }
  0x12   : > { %1201 = sst [smem:[#allocation12_spill]] %s1200_s24  ;;  %s159_s27 = sshll.u32 %s908_s26, 4  ;;  %s160_s27 = int_to_ptr.vmem [resolvable:$true] %s159_s27 }
  0x13   : > { %p1000_p12 = pnand %p597_p9, %p143_p11  ;;  %p708_p1 = scmp.lt.s32.totalorder %s906_s17, 2 }
  0x14   : > { %s29_s30 = sadd.s32 1, %s902_s16  ;;  %s779_s4 = scalar_lea.vmem %s160_s27, 1024 }
  0x15   : > { %p695_p13 = pneg %p1000_p12  ;;  %p1016_p2 = pnand %p708_p1, %p980_p4 }
  0x16   : > { %p780_p9 = scmp.ne.s32.totalorder %s160_s27, %s779_s4  ;;  %p787_p0 = scmp.lt.s32.totalorder %s160_s27, %s160_s27 }
  0x17   : > { %p1010_p5 = pnand %p695_p13, %p976_p3  ;;  %p788_p8 = scmp.lt.s32.totalorder %s779_s4, %s779_s4 }
  0x19   : > { %p770_p7 = pneg %p1010_p5  ;;  %p789_p6 = por %p788_p8, %p787_p0 }
  0x1b   : > { %p782_p11 = pnand %p780_p9, %p770_p7 }
  0x1d   : > { %p783_p10 = pneg %p782_p11 }
  0x1f   : > { %p790_p13 = pnand %p789_p6, %p783_p10 }
  0x21   : > { %793 = shalt.err (!%p790_p13)
}
  0x22   : > { %s909_s5 = smov 512   ;;  %s910_s6 = smov 32  }
  0x23   : > { %698 = dma.hbm_to_vmem [thread:$0]  (!%p1010_p5), %s1186_s0, 1024, %s160_s27, [#allocation3], %s909_s5, %s909_s5, %s910_s6  }
  0x24   : > { %p30_p4 = scmp.ge.s32.totalorder %s29_s30, 2  ;;  %s65_s9 = sadd.s32 1, %s894_s14 }
  0x25   : > { %s173_s10 = sand.u32 1, %s894_s14   ;;  %s601_s19 = sshll.u32 %s902_s16, 7 }
  0x26   : > { %s1217_s30 = smov (%p30_p4, %s29_s30), 0  ;;  %s600_s11 = sshll.u32 %s173_s10, 9 }
  0x27   : > { %s62_s18 = ssub.s32 %s902_s16, %s1217_s30  ;;  %s182_s4 = scalar_lea.hbm %s1187_s1, %s601_s19 }
  0x28   : > { %p63_p6 = scmp.eq.s32.totalorder %s62_s18, 0  ;;  %s177_s28 = scalar_lea.vmem [#allocation5], %s600_s11 }
  0x29   : > { %s183_s17 = sshll.u32 %s177_s28, 4  ;;  %s174_s27 = scalar_lea.sflag [#allocation6], %s173_s10  ;;  %s184_s17 = int_to_ptr.vmem [resolvable:$true] %s183_s17 }
  0x2a   : > { %s1039_s24 = scalar_select %p63_p6, %s894_s14, %s65_s9  }
  0x2b   : > { %p796_p8 = pneg %p1016_p2  ;;  %s807_s5 = scalar_lea.vmem %s184_s17, 8192 }
  0x2c   : > { %p808_p10 = scmp.ne.s32.totalorder %s184_s17, %s807_s5  ;;  %s911_s6 = smov [#allocation5]  }
  0x2d   : > { %s812_s7 = sshll.u32 %s911_s6, 4  ;;  %s813_s7 = int_to_ptr.vmem [resolvable:$false] %s812_s7 }
  0x2e   : > { %p810_p0 = pnand %p808_p10, %p796_p8  ;;  %s814_s8 = scalar_lea.vmem %s813_s7, 16384 }
  0x2f   : > { %p815_p5 = scmp.lt.s32.totalorder %s184_s17, %s813_s7  ;;  %p816_p7 = scmp.lt.s32.totalorder %s814_s8, %s807_s5 }
  0x30   : > { %p811_p1 = pneg %p810_p0 }
  0x31   : > { %p817_p9 = por %p816_p7, %p815_p5 }
  0x33   : > { %p818_p11 = pnand %p817_p9, %p811_p1 }
  0x35   : > { %821 = shalt.err (!%p818_p11)
}
  0x36   : > { %s912_s11 = smov 256   ;;  %s913_s9 = smov 128  }
  0x37   : > { %s914_s18 = smov 8   ;;  %201 = sbr.rel (%p1000_p12) target bundleno = 320 (0x140), region = 32 }
  0x38   : > { %702 = dma.hbm_to_vmem [thread:$0]  (!%p1016_p2), %s182_s4, 8192, %s184_s17, %s174_s27, %s912_s11, %s913_s9, %s914_s18  }
  0x3c   : > { %873 = dma.done.wait (%p976_p3), [#allocation3], 1024  }
  0x3d   : > { %875 = vsyncadd (%p976_p3), [#allocation3], 4294966272  ;;  %s1052_s10 = sand.u32 1, %s890_s13   ;;  %p1205_p2 = scmp.ne.s32.totalorder %s1198_s22, 0 }
  0x3e   : > { %s604_s19 = sshll.u32 %s1052_s10, 9  ;;  %s208_s21 = scalar_lea.sflag [#allocation6], %s1052_s10 }
  0x3f   : > { %s1056_s26 = scalar_lea.vmem [#allocation5], %s604_s19 }
  0x40   : > { %877 = dma.done.wait (%p1205_p2), %s208_s21, 8192  }
  0x41   : > { %879 = vsyncadd (%p1205_p2), %s208_s21, 4294959104  ;;  %v281_v0 = vld [vmem:[%s1056_s26 + $0xf8] sm:$0xff]  ;;  %v280_v4 = vld [vmem:[%s1056_s26 + $0xf0] sm:$0xff]  ;;  %p238_p3 = scmp.lt.s32.totalorder %s898_s15, 1  ;;  %s605_s29 = sshll.u32 %s1052_s10, 4 }
  0x42   : > { %v313_v1 = vld [vmem:[%s1056_s26 + $0x1f8] sm:$0xff]  ;;  %611 = vmatprep.subr.mxu0 %v281_v0  ;;  %v312_v5 = vld [vmem:[%s1056_s26 + $0x1f0] sm:$0xff]  ;;  %v279_v8 = vld [vmem:[%s1056_s26 + $0xe8] sm:$0xff]  ;;  %s236_s4 = scalar_lea.vmem [#allocation7], %s605_s29  ;;  %s608_s27 = sshll.u32 %s898_s15, 7 }
  0x43   : > { %v265_v2 = vld [vmem:[%s1056_s26 + $0x78] sm:$0xff]  ;;  %649 = vmatprep.subr.mxu1 %v313_v1  ;;  %v264_v6 = vld [vmem:[%s1056_s26 + $0x70] sm:$0xff]  ;;  %v311_v9 = vld [vmem:[%s1056_s26 + $0x1e8] sm:$0xff]  ;;  %s239_s17 = scalar_select %p238_p3, %s898_s15, 1 }
  0x44   : > { %v297_v3 = vld [vmem:[%s1056_s26 + $0x178] sm:$0xff]  ;;  %612 = vmatpush3.msra.mxu0 %v265_v2  ;;  %v296_v7 = vld [vmem:[%s1056_s26 + $0x170] sm:$0xff]  ;;  %v263_v10 = vld [vmem:[%s1056_s26 + $0x68] sm:$0xff]  ;;  %s489_s28 = sshll.u32 %s236_s4, 4  ;;  %s1138_s7 = scalar_lea.hbm %s1189_s3, %s608_s27  ;;  %s1133_s28 = int_to_ptr.vmem [resolvable:$true] %s489_s28 }
  0x45   : > { %650 = vmatpush3.msra.mxu1 %v297_v3  ;;  %613 = vmatprep.subr.mxu0 %v280_v4  ;;  %v295_v11 = vld [vmem:[%s1056_s26 + $0x168] sm:$0xff]  ;;  %v278_v12 = vld [vmem:[%s1056_s26 + $0xe0] sm:$0xff]  ;;  %v277_v16 = vld [vmem:[%s1056_s26 + $0xd8] sm:$0xff]  ;;  %s240_s25 = scalar_lea.vmem %s1188_s2, %s239_s17  ;;  %s474_s8 = scalar_lea.sflag [#allocation4], %s1052_s10 }
  0x46   : > { %651 = vmatprep.subr.mxu1 %v312_v5  ;;  %614 = vmatpush3.msra.mxu0 %v264_v6  ;;  %v310_v13 = vld [vmem:[%s1056_s26 + $0x1e0] sm:$0xff]  ;;  %v309_v17 = vld [vmem:[%s1056_s26 + $0x1d8] sm:$0xff]  ;;  %v276_v20 = vld [vmem:[%s1056_s26 + $0xd0] sm:$0xff]  ;;  %s822_s11 = scalar_lea.vmem %s1133_s28, 256  ;;  %p1206_p13 = scmp.ne.s32.totalorder %s1199_s23, 0 }
  0x47   : > { %652 = vmatpush3.msra.mxu1 %v296_v7  ;;  %615 = vmatprep.subr.mxu0 %v279_v8  ;;  %v262_v14 = vld [vmem:[%s1056_s26 + $0x60] sm:$0xff]  ;;  %v261_v18 = vld [vmem:[%s1056_s26 + $0x58] sm:$0xff]  ;;  %v308_v21 = vld [vmem:[%s1056_s26 + $0x1d0] sm:$0xff]  ;;  %p823_p12 = scmp.ne.s32.totalorder %s1133_s28, %s822_s11  ;;  %s915_s15 = smov [#allocation7]  }
  0x48   : > { %653 = vmatprep.subr.mxu1 %v311_v9  ;;  %v294_v15 = vld [vmem:[%s1056_s26 + $0x160] sm:$0xff]  ;;  %616 = vmatpush3.msra.mxu0 %v263_v10  ;;  %v293_v19 = vld [vmem:[%s1056_s26 + $0x158] sm:$0xff]  ;;  %v260_v22 = vld [vmem:[%s1056_s26 + $0x50] sm:$0xff]  ;;  %s826_s9 = sshll.u32 %s915_s15, 4  ;;  %s827_s9 = int_to_ptr.vmem [resolvable:$false] %s826_s9 }
  0x49   : > { %654 = vmatpush3.msra.mxu1 %v295_v11  ;;  %617 = vmatprep.subr.mxu0 %v278_v12  ;;  %v292_v23 = vld [vmem:[%s1056_s26 + $0x150] sm:$0xff]  ;;  %v275_v24 = vld [vmem:[%s1056_s26 + $0xc8] sm:$0xff]  ;;  %v274_v28 = vld [vmem:[%s1056_s26 + $0xc0] sm:$0xff]  ;;  %p824_p4 = pnand %p823_p12, %p1206_p13  ;;  %s828_s18 = scalar_lea.vmem %s827_s9, 512 }
  0x4a   : > { %655 = vmatprep.subr.mxu1 %v310_v13  ;;  %618 = vmatpush3.msra.mxu0 %v262_v14  ;;  %v307_v25 = vld [vmem:[%s1056_s26 + $0x1c8] sm:$0xff]  ;;  %v306_v29 = vld [vmem:[%s1056_s26 + $0x1c0] sm:$0xff]  ;;  %v273_v32 = vld [vmem:[%s1056_s26 + $0xb8] sm:$0xff]  ;;  %p829_p8 = scmp.lt.s32.totalorder %s1133_s28, %s827_s9  ;;  %p830_p10 = scmp.lt.s32.totalorder %s828_s18, %s822_s11 }
  0x4b   : > { %656 = vmatpush3.msra.mxu1 %v294_v15  ;;  %619 = vmatprep.subr.mxu0 %v277_v16  ;;  %v259_v26 = vld [vmem:[%s1056_s26 + $0x48] sm:$0xff]  ;;  %v258_v30 = vld [vmem:[%s1056_s26 + $0x40] sm:$0xff]  ;;  %v305_v33 = vld [vmem:[%s1056_s26 + $0x1b8] sm:$0xff]  ;;  %p825_p6 = pneg %p824_p4 }
  0x4c   : > { %657 = vmatprep.subr.mxu1 %v309_v17  ;;  %620 = vmatpush3.msra.mxu0 %v261_v18  ;;  %v291_v27 = vld [vmem:[%s1056_s26 + $0x148] sm:$0xff]  ;;  %v290_v31 = vld [vmem:[%s1056_s26 + $0x140] sm:$0xff]  ;;  %v257_v34 = vld [vmem:[%s1056_s26 + $0x38] sm:$0xff]  ;;  %p831_p0 = por %p830_p10, %p829_p8 }
  0x4d   : > { %658 = vmatpush3.msra.mxu1 %v293_v19  ;;  %621 = vmatprep.subr.mxu0 %v276_v20  ;;  %v289_v35 = vld [vmem:[%s1056_s26 + $0x138] sm:$0xff]  ;;  %v272_v36 = vld [vmem:[%s1056_s26 + $0xb0] sm:$0xff]  ;;  %v271_v40 = vld [vmem:[%s1056_s26 + $0xa8] sm:$0xff] }
  0x4e   : > { %659 = vmatprep.subr.mxu1 %v308_v21  ;;  %622 = vmatpush3.msra.mxu0 %v260_v22  ;;  %v304_v37 = vld [vmem:[%s1056_s26 + $0x1b0] sm:$0xff]  ;;  %v303_v41 = vld [vmem:[%s1056_s26 + $0x1a8] sm:$0xff]  ;;  %v270_v44 = vld [vmem:[%s1056_s26 + $0xa0] sm:$0xff]  ;;  %p832_p1 = pnand %p831_p0, %p825_p6 }
  0x4f   : > { %660 = vmatpush3.msra.mxu1 %v292_v23  ;;  %623 = vmatprep.subr.mxu0 %v275_v24  ;;  %v256_v38 = vld [vmem:[%s1056_s26 + $0x30] sm:$0xff]  ;;  %v255_v42 = vld [vmem:[%s1056_s26 + $0x28] sm:$0xff]  ;;  %v302_v45 = vld [vmem:[%s1056_s26 + $0x1a0] sm:$0xff] }
  0x50   : > { %661 = vmatprep.subr.mxu1 %v307_v25  ;;  %624 = vmatpush3.msra.mxu0 %v259_v26  ;;  %v288_v39 = vld [vmem:[%s1056_s26 + $0x130] sm:$0xff]  ;;  %v287_v43 = vld [vmem:[%s1056_s26 + $0x128] sm:$0xff]  ;;  %v254_v46 = vld [vmem:[%s1056_s26 + $0x20] sm:$0xff] }
  0x51   : > { %662 = vmatpush3.msra.mxu1 %v291_v27  ;;  %625 = vmatprep.subr.mxu0 %v274_v28  ;;  %v286_v47 = vld [vmem:[%s1056_s26 + $0x120] sm:$0xff]  ;;  %v269_v48 = vld [vmem:[%s1056_s26 + $0x98] sm:$0xff]  ;;  %v268_v52 = vld [vmem:[%s1056_s26 + $0x90] sm:$0xff] }
  0x52   : > { %663 = vmatprep.subr.mxu1 %v306_v29  ;;  %626 = vmatpush3.msra.mxu0 %v258_v30  ;;  %v301_v49 = vld [vmem:[%s1056_s26 + $0x198] sm:$0xff]  ;;  %v300_v53 = vld [vmem:[%s1056_s26 + $0x190] sm:$0xff]  ;;  %v267_v56 = vld [vmem:[%s1056_s26 + $0x88] sm:$0xff] }
  0x53   : > { %664 = vmatpush3.msra.mxu1 %v290_v31  ;;  %627 = vmatprep.subr.mxu0 %v273_v32  ;;  %v253_v50 = vld [vmem:[%s1056_s26 + $0x18] sm:$0xff]  ;;  %v252_v54 = vld [vmem:[%s1056_s26 + $0x10] sm:$0xff]  ;;  %v299_v57 = vld [vmem:[%s1056_s26 + $0x188] sm:$0xff] }
  0x54   : > { %665 = vmatprep.subr.mxu1 %v305_v33  ;;  %628 = vmatpush3.msra.mxu0 %v257_v34  ;;  %v285_v51 = vld [vmem:[%s1056_s26 + $0x118] sm:$0xff]  ;;  %v284_v55 = vld [vmem:[%s1056_s26 + $0x110] sm:$0xff]  ;;  %v251_v58 = vld [vmem:[%s1056_s26 + $0x8] sm:$0xff] }
  0x55   : > { %666 = vmatpush3.msra.mxu1 %v289_v35  ;;  %629 = vmatprep.subr.mxu0 %v272_v36  ;;  %v283_v59 = vld [vmem:[%s1056_s26 + $0x108] sm:$0xff]  ;;  %v266_v60 = vld [vmem:[%s1056_s26 + $0x80] sm:$0xff]  ;;  %v245_v1 = vld [vmem:[#allocation2 + $0x18] sm:$0xff] }
  0x56   : > { %667 = vmatprep.subr.mxu1 %v304_v37  ;;  %630 = vmatpush3.msra.mxu0 %v256_v38  ;;  %v298_v61 = vld [vmem:[%s1056_s26 + $0x180] sm:$0xff]  ;;  %v243_v63 = vld [vmem:[#allocation2 + $0x8] sm:$0xff]  ;;  %v244_v3 = vld [vmem:[#allocation2 + $0x10] sm:$0xff] }
  0x57   : > { %668 = vmatpush3.msra.mxu1 %v288_v39  ;;  %631 = vmatprep.subr.mxu0 %v271_v40  ;;  %v250_v62 = vld [vmem:[%s1056_s26] sm:$0xff]  ;;  %v247_v4 = vld [vmem:[#allocation2 + $0x28] sm:$0xff]  ;;  %v249_v5 = vld [vmem:[#allocation2 + $0x38] sm:$0xff] }
  0x58   : > { %669 = vmatprep.subr.mxu1 %v303_v41  ;;  %632 = vmatpush3.msra.mxu0 %v255_v42  ;;  %v282_v0 = vld [vmem:[%s1056_s26 + $0x100] sm:$0xff]  ;;  %v248_v7 = vld [vmem:[#allocation2 + $0x30] sm:$0xff] }
  0x59   : > { %670 = vmatpush3.msra.mxu1 %v287_v43  ;;  %633 = vmatprep.subr.mxu0 %v270_v44  ;;  %v242_v2 = vld [vmem:[#allocation2] sm:$0xff] }
  0x5a   : > { %671 = vmatprep.subr.mxu1 %v302_v45  ;;  %634 = vmatpush3.msra.mxu0 %v254_v46  ;;  %v246_v6 = vld [vmem:[#allocation2 + $0x20] sm:$0xff] }
  0x5b   : > { %672 = vmatpush3.msra.mxu1 %v286_v47  ;;  %635 = vmatprep.subr.mxu0 %v269_v48  ;;  %v606_v10 = vld [vmem:[%s240_s25] ss:$0 sm:$0xff] }
  0x5c   : > { %673 = vmatprep.subr.mxu1 %v301_v49  ;;  %636 = vmatpush3.msra.mxu0 %v253_v50 }
  0x5d   : > { %674 = vmatpush3.msra.mxu1 %v285_v51  ;;  %637 = vmatprep.subr.mxu0 %v268_v52 }
  0x5e   : > { %675 = vmatprep.subr.mxu1 %v300_v53  ;;  %638 = vmatpush3.msra.mxu0 %v252_v54 }
  0x5f   : > { %676 = vmatpush3.msra.mxu1 %v284_v55  ;;  %639 = vmatprep.subr.mxu0 %v267_v56 }
  0x60   : > { %677 = vmatprep.subr.mxu1 %v299_v57  ;;  %640 = vmatpush3.msra.mxu0 %v251_v58 }
  0x61   : > { %678 = vmatpush3.msra.mxu1 %v283_v59  ;;  %641 = vmatprep.subr.mxu0 %v266_v60 }
  0x62   : > { %679 = vmatprep.subr.mxu1 %v298_v61  ;;  %642 = vmatpush3.msra.mxu0 %v250_v62 }
  0x63   : > { %385 = vmatprep.mubr.f32.mxu0 %v243_v63  ;;  %680 = vmatpush3.msra.mxu1 %v282_v0 }
  0x64   : > { %460 = vmatprep.mubr.f32.mxu1 %v245_v1  ;;  %386 = vmatmul.mubr.f32.vlgmr.msra.gmra.mxu0 %v242_v2 }
  0x65   : > { %461 = vmatmul.mubr.f32.vlgmr.msra.gmra.mxu1 %v244_v3  ;;  %390 = vmatprep.mubr.f32.mxu0 %v247_v4 }
  0x66   : > { %465 = vmatprep.mubr.f32.mxu1 %v249_v5 }
  0x68   : > { %391 = vmatmul.mubr.f32.gmra.mxu0 %v246_v6 }
  0x69   : > { %466 = vmatmul.mubr.f32.gmra.mxu1 %v248_v7 }
 0x124   : > { %v643_v8 = vpop.f32.mrf.mxu0 }
 0x125   : > { %v681_v9 = vpop.f32.mrf.mxu1 }
 0x126   : > { %v644_v11 = vpop.f32.mrf.mxu0 }
 0x127   : > { %v682_v12 = vpop.f32.mrf.mxu1  ;;  %v645_v13 = vadd.f32 %v644_v11, %v643_v8 }
 0x128   : > { %v646_v14 = vpop.f32.mrf.mxu0  ;;  %v683_v17 = vadd.f32 %v682_v12, %v681_v9 }
 0x129   : > { %v684_v15 = vpop.f32.mrf.mxu1  ;;  %v388_v16 = vadd.f32 %v645_v13, %v606_v10 }
 0x12a   : > { %v647_v18 = vpop.f32.mrf.mxu0 }
 0x12b   : > { %v685_v19 = vpop.f32.mrf.mxu1  ;;  %v463_v20 = vadd.f32 %v683_v17, %v388_v16  ;;  %v648_v21 = vadd.f32 %v647_v18, %v646_v14 }
 0x12c   : > { %v686_v23 = vadd.f32 %v685_v19, %v684_v15 }
 0x12d   : > { %471 = vst [vmem:[%s236_s4] sm:$0xff] %v463_v20  ;;  %v393_v22 = vadd.f32 %v648_v21, %v606_v10 }
 0x12f   : > { %v468_v24 = vadd.f32 %v686_v23, %v393_v22 }
 0x131   : > { %472 = vst [vmem:[%s236_s4 + $0x8] sm:$0xff] %v468_v24 }
 0x132   : > { %835 = shalt.err (!%p832_p1)
}
 0x133   : > { %s836_s19 = scalar_lea.hbm %s1138_s7, 256  ;;  %s840_s17 = scalar_lea.hbm %s1189_s3, 512 }
 0x134   : > { %p837_p5 = scmp.ne.s32.totalorder %s1138_s7, %s836_s19  ;;  %p841_p11 = scmp.lt.s32.totalorder %s1138_s7, %s1189_s3 }
 0x135   : > { %p842_p2 = scmp.lt.s32.totalorder %s840_s17, %s836_s19 }
 0x136   : > { %p838_p7 = pnand %p837_p5, %p1206_p13 }
 0x137   : > { %p843_p3 = por %p842_p2, %p841_p11 }
 0x138   : > { %p839_p9 = pneg %p838_p7 }
 0x13a   : > { %p844_p12 = pnand %p843_p3, %p839_p9 }
 0x13c   : > { %847 = shalt.err (!%p844_p12)
}
 0x13d   : > { %s916_s25 = smov 128   ;;  %s917_s29 = smov 256  }
 0x13e   : > { %s918_s4 = smov 8  }
 0x13f   : > { %693 = dma.vmem_to_hbm [thread:$0]  (%p1206_p13), %s1133_s28, 256, %s1138_s7, %s474_s8, %s916_s25, %s917_s29, %s918_s4  }
 0x140 PF: > { %s1207_s27 = sld [smem:[#allocation12_spill]]  ;;  %s504_s6 = sand.u32 1, %s886_s12  }
 0x141   : > { %s1208_s5 = sld [smem:[#allocation11_spill]]  ;;  %s505_s11 = scalar_lea.sflag [#allocation4], %s504_s6 }
 0x146   : > { %p1209_p4 = scmp.ne.s32.totalorder %s1207_s27, 0 }
 0x147   : > { %p1210_p6 = scmp.ge.s32.totalorder %s1208_s5, 2 }
 0x149   : > { %p704_p8 = pnand %p1210_p6, %p1209_p4 }
 0x14b   : > { %p705_p10 = pneg %p704_p8 }
 0x14d   : > { %881 = dma.done.wait (%p705_p10), %s505_s11, 256  }
 0x14e   : > { %883 = vsyncadd (%p705_p10), %s505_s11, 4294967040  ;;  %s20_s17 = sadd.s32 1, %s1208_s5   ;;  %s1211_s12 = smov %s890_s13 }
 0x14f   : > { %p17_p0 = scmp.ge.s32.totalorder %s20_s17, 4   ;;  %s1212_s13 = smov %s894_s14 }
 0x150   : > { %s1213_s14 = smov %s1039_s24  ;;  %s1214_s15 = smov %s902_s16 }
 0x151   : > { %s1215_s16 = smov %s1217_s30  ;;  %19 = sbr.rel (!%p17_p0) target bundleno = 7 (0x7), region = 86 }
 0x156   :  { %510 = vsyncpa [#allocation3], 1 }
 0x157   :  { %512 = vsyncpa [#allocation3 + $0x1], 1 }
 0x158   :  { %513 = vsyncpa [#allocation6], 1 }
 0x159   :  { %515 = vsyncpa [#allocation6 + $0x1], 1 }
 0x15a   :  { %516 = vsyncpa [#allocation4], 1 }
 0x15b   :  { %518 = vsyncpa [#allocation4 + $0x1], 1 }

</bundles_post_ra>
